<compile_context>
chip_gen: v6e
topology: v6e:2x2x1
jax: 0.10.0
libtpu: 0.0.40
codegen_flags: <defaults>
</compile_context>

<pallas_src>
import jax
import jax.numpy as jnp
from jax.experimental import pallas as pl
from jax.experimental.pallas import tpu as pltpu

HIDDEN = 64


def actor_kernel(x_ref, w1_ref, b1_ref, w2_ref, b2_ref, w3_ref, b3_ref,
                 logits_ref, logp_ref):
    # cast state to bf16 in-kernel (cheap VPU op, hidden under DMA/MXU)
    x = x_ref[...].astype(jnp.bfloat16)

    # fc1 + relu  (bf16 matmul, f32 accumulate / bias / relu)
    h1 = jnp.dot(x, w1_ref[...], preferred_element_type=jnp.float32)
    h1 = jnp.maximum(h1 + b1_ref[...], 0.0)

    # fc2 + relu
    h2 = jnp.dot(h1.astype(jnp.bfloat16), w2_ref[...],
                 preferred_element_type=jnp.float32)
    h2 = jnp.maximum(h2 + b2_ref[...], 0.0)

    # fc3 -> logits
    logits = jnp.dot(h2.astype(jnp.bfloat16), w3_ref[...],
                     preferred_element_type=jnp.float32)
    logits = logits + b3_ref[...]

    # Categorical(logits=...) normalization: log_probs = logits - logsumexp(logits)
    m = jnp.max(logits, axis=-1, keepdims=True)
    lse = m + jnp.log(jnp.sum(jnp.exp(logits - m), axis=-1, keepdims=True))

    logits_ref[...] = logits
    logp_ref[...] = logits - lse


def actor_forward(state, params, *, tb=512):
    """state: (B, n_states) f32.  params: dict of w1,b1,w2,b2,w3,b3 (f32).
    Returns (logits, log_probs), each (B, n_actions) f32."""
    # weights are tiny and stay resident in VMEM; bf16 for the MXU path
    w1 = params["w1"].astype(jnp.bfloat16)
    w2 = params["w2"].astype(jnp.bfloat16)
    w3 = params["w3"].astype(jnp.bfloat16)
    b1, b2, b3 = params["b1"], params["b2"], params["b3"]

    B, n_states = state.shape
    H = w1.shape[1]
    A = w3.shape[1]

    def round16(v):
        return ((int(v) + 15) // 16) * 16

    # batch tile: multiple of 16 sublanes (bf16 packing), no batch padding
    tb = max(16, (int(tb) // 16) * 16)
    if B >= 32:
        # ensure >= 2 grid steps when the batch allows two >=16-row tiles
        # (keeps both TensorCores busy on v7x; negligible overhead elsewhere)
        tb = min(tb, round16(pl.cdiv(B, 2)))
    tb = min(tb, round16(B))
    grid = (pl.cdiv(B, tb),)  # ragged last block handled by Pallas masking

    def resident(shape):
        # whole array resident in VMEM across all grid steps (constant index_map)
        return pl.BlockSpec(shape, lambda *_: (0,) * len(shape))

    logits, log_probs = pl.pallas_call(
        actor_kernel,
        out_shape=(jax.ShapeDtypeStruct((B, A), jnp.float32),
                   jax.ShapeDtypeStruct((B, A), jnp.float32)),
        grid=grid,
        in_specs=[
            pl.BlockSpec((tb, n_states), lambda i: (i, 0)),   # pipelined f32 state tile
            resident((n_states, H)), resident((1, H)),
            resident((H, H)), resident((1, H)),
            resident((H, A)), resident((1, A)),
        ],
        out_specs=[pl.BlockSpec((tb, A), lambda i: (i, 0)),
                   pl.BlockSpec((tb, A), lambda i: (i, 0))],
        compiler_params=pltpu.CompilerParams(
            dimension_semantics=("parallel",)),
    )(state, w1, b1, w2, b2, w3, b3)

    return logits, log_probs


def init_params(key, n_states, n_actions):
    """Deterministic init mimicking nn.Linear's U(-1/sqrt(fan_in), 1/sqrt(fan_in))."""
    ks = jax.random.split(key, 6)

    def linear(kw, kb, fan_in, fan_out):
        bound = 1.0 / jnp.sqrt(jnp.float32(fan_in))
        w = jax.random.uniform(kw, (fan_in, fan_out), jnp.float32, -bound, bound)
        b = jax.random.uniform(kb, (1, fan_out), jnp.float32, -bound, bound)
        return w, b

    w1, b1 = linear(ks[0], ks[1], n_states, HIDDEN)
    w2, b2 = linear(ks[2], ks[3], HIDDEN, HIDDEN)
    w3, b3 = linear(ks[4], ks[5], HIDDEN, n_actions)
    return {"w1": w1, "b1": b1, "w2": w2, "b2": b2, "w3": w3, "b3": b3}


def reference_forward_bf16(state, params):
    """Pure-JAX reference mirroring the kernel's bf16-matmul / f32-accumulate path."""
    w1 = params["w1"].astype(jnp.bfloat16)
    w2 = params["w2"].astype(jnp.bfloat16)
    w3 = params["w3"].astype(jnp.bfloat16)
    x = state.astype(jnp.bfloat16)

    h1 = jnp.maximum(
        jnp.dot(x, w1, preferred_element_type=jnp.float32) + params["b1"], 0.0)
    h2 = jnp.maximum(
        jnp.dot(h1.astype(jnp.bfloat16), w2,
                preferred_element_type=jnp.float32) + params["b2"], 0.0)
    logits = jnp.dot(h2.astype(jnp.bfloat16), w3,
                     preferred_element_type=jnp.float32) + params["b3"]
    log_probs = logits - jax.scipy.special.logsumexp(logits, axis=-1, keepdims=True)
    return logits, log_probs


def reference_forward_f32(state, params):
    """Full f32 baseline matching the PyTorch ActorNetwork forward."""
    h1 = jnp.maximum(state @ params["w1"] + params["b1"], 0.0)
    h2 = jnp.maximum(h1 @ params["w2"] + params["b2"], 0.0)
    logits = h2 @ params["w3"] + params["b3"]
    log_probs = logits - jax.scipy.special.logsumexp(logits, axis=-1, keepdims=True)
    return logits, log_probs


# TODO(synk): the Adam optimizer, checkpoint save/load and Categorical .sample()
# of the PyTorch module are host-side / stateful and are not part of the kernel;
# the kernel returns (logits, log_probs), from which a Categorical is fully defined.

if __name__ == "__main__":
    key = jax.random.PRNGKey(0)
    k_param, k_state, k_state2 = jax.random.split(key, 3)

    n_states = 16
    n_actions = 6
    params = init_params(k_param, n_states, n_actions)

    # --- test 1: small batch, single grid step ---
    batch = 16
    state = jax.random.normal(k_state, (batch, n_states), jnp.float32)
    logits, log_probs = actor_forward(state, params)
    logits, log_probs = jax.block_until_ready((logits, log_probs))

    ref_logits, ref_log_probs = reference_forward_bf16(state, params)
    f32_logits, f32_log_probs = reference_forward_f32(state, params)
    assert logits.shape == (batch, n_actions)
    assert log_probs.shape == (batch, n_actions)
    assert jnp.allclose(logits, ref_logits, atol=1e-3, rtol=1e-3)
    assert jnp.allclose(log_probs, ref_log_probs, atol=1e-3, rtol=1e-3)
    # bf16-path result stays close to the f32 PyTorch-equivalent baseline
    assert jnp.allclose(logits, f32_logits, atol=1e-1)
    assert jnp.allclose(log_probs, f32_log_probs, atol=1e-1)
    # probabilities sum to 1 (Categorical distribution is well-formed)
    assert jnp.allclose(jnp.sum(jnp.exp(log_probs), axis=-1), 1.0, atol=1e-5)

    # --- test 2: ragged batch, multi-step tiled path (grid=(3,), last block masked) ---
    batch2 = 40
    state2 = jax.random.normal(k_state2, (batch2, n_states), jnp.float32)
    logits2, log_probs2 = actor_forward(state2, params, tb=16)
    logits2, log_probs2 = jax.block_until_ready((logits2, log_probs2))
    ref_logits2, ref_log_probs2 = reference_forward_bf16(state2, params)
    assert logits2.shape == (batch2, n_actions)
    assert jnp.allclose(logits2, ref_logits2, atol=1e-3, rtol=1e-3)
    assert jnp.allclose(log_probs2, ref_log_probs2, atol=1e-3, rtol=1e-3)
    assert jnp.allclose(jnp.sum(jnp.exp(log_probs2), axis=-1), 1.0, atol=1e-5)

    print("KERNEL_OK")
</pallas_src>

<mosaic_0001>
module attributes {stable_mosaic.version = 11 : i64} {
  func.func @actor_kernel(%arg0: i32, %arg1: memref<16x16xf32, #tpu.memory_space<vmem>>, %arg2: memref<16x64xbf16, #tpu.memory_space<vmem>>, %arg3: memref<1x64xf32, #tpu.memory_space<vmem>>, %arg4: memref<64x64xbf16, #tpu.memory_space<vmem>>, %arg5: memref<1x64xf32, #tpu.memory_space<vmem>>, %arg6: memref<64x6xbf16, #tpu.memory_space<vmem>>, %arg7: memref<1x6xf32, #tpu.memory_space<vmem>>, %arg8: memref<16x6xf32, #tpu.memory_space<vmem>>, %arg9: memref<16x6xf32, #tpu.memory_space<vmem>>) attributes {dimension_semantics = [#tpu.dimension_semantics<parallel>], iteration_bounds = array<i64: 1>, scalar_prefetch = 0 : i64, scratch_operands = 0 : i64, tpu.core_type = #tpu.core_type<tc>, window_params = [{transform_indices = @transform_0, window_bounds = array<i64: 16, 16>}, {pipeline_mode = #tpu.pipeline_mode<synchronous>, transform_indices = @transform_1, window_bounds = array<i64: 16, 64>}, {pipeline_mode = #tpu.pipeline_mode<synchronous>, transform_indices = @transform_2, window_bounds = array<i64: 1, 64>}, {pipeline_mode = #tpu.pipeline_mode<synchronous>, transform_indices = @transform_3, window_bounds = array<i64: 64, 64>}, {pipeline_mode = #tpu.pipeline_mode<synchronous>, transform_indices = @transform_4, window_bounds = array<i64: 1, 64>}, {pipeline_mode = #tpu.pipeline_mode<synchronous>, transform_indices = @transform_5, window_bounds = array<i64: 64, 6>}, {pipeline_mode = #tpu.pipeline_mode<synchronous>, transform_indices = @transform_6, window_bounds = array<i64: 1, 6>}, {transform_indices = @transform_7, window_bounds = array<i64: 16, 6>}, {transform_indices = @transform_8, window_bounds = array<i64: 16, 6>}]} {
    %c0 = arith.constant 0 : index
    %c0_0 = arith.constant 0 : index
    %0 = vector.load %arg1[%c0, %c0_0] : memref<16x16xf32, #tpu.memory_space<vmem>>, vector<16x16xf32>
    %1 = arith.truncf %0 : vector<16x16xf32> to vector<16x16xbf16>
    %c0_1 = arith.constant 0 : index
    %c0_2 = arith.constant 0 : index
    %2 = vector.load %arg2[%c0_1, %c0_2] : memref<16x64xbf16, #tpu.memory_space<vmem>>, vector<16x64xbf16>
    %cst = arith.constant dense<0.000000e+00> : vector<16x64xf32>
    %3 = tpu.matmul %1, %2, %cst {dimension_numbers = #tpu.dot_dimension_numbers<[1], [0], [0], [1], [0, 0, 1, 1], [], []>} : vector<16x16xbf16>, vector<16x64xbf16>, vector<16x64xf32> -> vector<16x64xf32>
    %c0_3 = arith.constant 0 : index
    %c0_4 = arith.constant 0 : index
    %4 = vector.load %arg3[%c0_3, %c0_4] : memref<1x64xf32, #tpu.memory_space<vmem>>, vector<1x64xf32>
    %5 = vector.broadcast %4 : vector<1x64xf32> to vector<16x64xf32>
    %6 = arith.addf %3, %5 : vector<16x64xf32>
    %cst_5 = arith.constant 0.000000e+00 : f32
    %7 = vector.broadcast %cst_5 : f32 to vector<16x64xf32>
    %8 = arith.maximumf %6, %7 : vector<16x64xf32>
    %9 = arith.truncf %8 : vector<16x64xf32> to vector<16x64xbf16>
    %c0_6 = arith.constant 0 : index
    %c0_7 = arith.constant 0 : index
    %10 = vector.load %arg4[%c0_6, %c0_7] : memref<64x64xbf16, #tpu.memory_space<vmem>>, vector<64x64xbf16>
    %cst_8 = arith.constant dense<0.000000e+00> : vector<16x64xf32>
    %11 = tpu.matmul %9, %10, %cst_8 {dimension_numbers = #tpu.dot_dimension_numbers<[1], [0], [0], [1], [0, 0, 1, 1], [], []>} : vector<16x64xbf16>, vector<64x64xbf16>, vector<16x64xf32> -> vector<16x64xf32>
    %c0_9 = arith.constant 0 : index
    %c0_10 = arith.constant 0 : index
    %12 = vector.load %arg5[%c0_9, %c0_10] : memref<1x64xf32, #tpu.memory_space<vmem>>, vector<1x64xf32>
    %13 = vector.broadcast %12 : vector<1x64xf32> to vector<16x64xf32>
    %14 = arith.addf %11, %13 : vector<16x64xf32>
    %cst_11 = arith.constant 0.000000e+00 : f32
    %15 = vector.broadcast %cst_11 : f32 to vector<16x64xf32>
    %16 = arith.maximumf %14, %15 : vector<16x64xf32>
    %17 = arith.truncf %16 : vector<16x64xf32> to vector<16x64xbf16>
    %c0_12 = arith.constant 0 : index
    %c0_13 = arith.constant 0 : index
    %18 = vector.load %arg6[%c0_12, %c0_13] : memref<64x6xbf16, #tpu.memory_space<vmem>>, vector<64x6xbf16>
    %cst_14 = arith.constant dense<0.000000e+00> : vector<16x6xf32>
    %19 = tpu.matmul %17, %18, %cst_14 {dimension_numbers = #tpu.dot_dimension_numbers<[1], [0], [0], [1], [0, 0, 1, 1], [], []>} : vector<16x64xbf16>, vector<64x6xbf16>, vector<16x6xf32> -> vector<16x6xf32>
    %c0_15 = arith.constant 0 : index
    %c0_16 = arith.constant 0 : index
    %20 = vector.load %arg7[%c0_15, %c0_16] : memref<1x6xf32, #tpu.memory_space<vmem>>, vector<1x6xf32>
    %21 = vector.broadcast %20 : vector<1x6xf32> to vector<16x6xf32>
    %22 = arith.addf %19, %21 : vector<16x6xf32>
    %cst_17 = arith.constant dense<0xFF800000> : vector<16xf32>
    %23 = vector.multi_reduction <maximumf>, %22, %cst_17 [1] : vector<16x6xf32> to vector<16xf32>
    %24 = vector.shape_cast %23 : vector<16xf32> to vector<16x1xf32>
    %25 = vector.broadcast %24 : vector<16x1xf32> to vector<16x6xf32>
    %26 = arith.subf %22, %25 : vector<16x6xf32>
    %27 = math.exp %26 : vector<16x6xf32>
    %cst_18 = arith.constant dense<0.000000e+00> : vector<16xf32>
    %28 = vector.multi_reduction <add>, %27, %cst_18 [1] : vector<16x6xf32> to vector<16xf32>
    %29 = vector.shape_cast %28 : vector<16xf32> to vector<16x1xf32>
    %30 = math.log %29 : vector<16x1xf32>
    %31 = arith.addf %24, %30 : vector<16x1xf32>
    %c0_19 = arith.constant 0 : index
    %c0_20 = arith.constant 0 : index
    %32 = vector.load %arg8[%c0_19, %c0_20] : memref<16x6xf32, #tpu.memory_space<vmem>>, vector<16x6xf32>
    tpu.vector_store %arg8[%c0_19, %c0_20], %22 {strides = array<i32>} : memref<16x6xf32, #tpu.memory_space<vmem>>, vector<16x6xf32>,
    %33 = vector.broadcast %31 : vector<16x1xf32> to vector<16x6xf32>
    %34 = arith.subf %22, %33 : vector<16x6xf32>
    %c0_21 = arith.constant 0 : index
    %c0_22 = arith.constant 0 : index
    %35 = vector.load %arg9[%c0_21, %c0_22] : memref<16x6xf32, #tpu.memory_space<vmem>>, vector<16x6xf32>
    tpu.vector_store %arg9[%c0_21, %c0_22], %34 {strides = array<i32>} : memref<16x6xf32, #tpu.memory_space<vmem>>, vector<16x6xf32>,
    return
  }
  func.func @transform_0(%arg0: i32) -> (i32, i32) {
    %c0_i32 = arith.constant 0 : i32
    %c0_i32_0 = arith.constant 0 : i32
    return %arg0, %c0_i32 : i32, i32
  }
  func.func @transform_1(%arg0: i32) -> (i32, i32) {
    %c0_i32 = arith.constant 0 : i32
    %c0_i32_0 = arith.constant 0 : i32
    %c0_i32_1 = arith.constant 0 : i32
    return %c0_i32, %c0_i32_0 : i32, i32
  }
  func.func @transform_2(%arg0: i32) -> (i32, i32) {
    %c0_i32 = arith.constant 0 : i32
    %c0_i32_0 = arith.constant 0 : i32
    %c0_i32_1 = arith.constant 0 : i32
    return %c0_i32, %c0_i32_0 : i32, i32
  }
  func.func @transform_3(%arg0: i32) -> (i32, i32) {
    %c0_i32 = arith.constant 0 : i32
    %c0_i32_0 = arith.constant 0 : i32
    %c0_i32_1 = arith.constant 0 : i32
    return %c0_i32, %c0_i32_0 : i32, i32
  }
  func.func @transform_4(%arg0: i32) -> (i32, i32) {
    %c0_i32 = arith.constant 0 : i32
    %c0_i32_0 = arith.constant 0 : i32
    %c0_i32_1 = arith.constant 0 : i32
    return %c0_i32, %c0_i32_0 : i32, i32
  }
  func.func @transform_5(%arg0: i32) -> (i32, i32) {
    %c0_i32 = arith.constant 0 : i32
    %c0_i32_0 = arith.constant 0 : i32
    %c0_i32_1 = arith.constant 0 : i32
    return %c0_i32, %c0_i32_0 : i32, i32
  }
  func.func @transform_6(%arg0: i32) -> (i32, i32) {
    %c0_i32 = arith.constant 0 : i32
    %c0_i32_0 = arith.constant 0 : i32
    %c0_i32_1 = arith.constant 0 : i32
    return %c0_i32, %c0_i32_0 : i32, i32
  }
  func.func @transform_7(%arg0: i32) -> (i32, i32) {
    %c0_i32 = arith.constant 0 : i32
    %c0_i32_0 = arith.constant 0 : i32
    return %arg0, %c0_i32 : i32, i32
  }
  func.func @transform_8(%arg0: i32) -> (i32, i32) {
    %c0_i32 = arith.constant 0 : i32
    %c0_i32_0 = arith.constant 0 : i32
    return %arg0, %c0_i32 : i32, i32
  }
}

</mosaic_0001>

<bundles_post_ra>
// kernel: tpu_custom_call.1
= control target key start
LH: loop header
LB: loop body
LE: loop exit
PB: predicated region body
PF: predicated region fallthrough
CT: control target
= control target key end

     0   :  { %14 = vsyncpa [#allocation3], 0  ;;  %s568_s0 = inlined_call_operand.hbm [shape: f32[16,16], index: 0, kind: input, shape index: {}]   ;;  %s569_s1 = inlined_call_operand.vmem [shape: bf16[16,64], index: 1, kind: input, shape index: {}]   ;;  %s570_s2 = inlined_call_operand.vmem [shape: f32[1,64], index: 2, kind: input, shape index: {}]   ;;  %s571_s3 = inlined_call_operand.vmem [shape: bf16[64,64], index: 3, kind: input, shape index: {}]   ;;  %s572_s4 = inlined_call_operand.hbm [shape: f32[1,64], index: 4, kind: input, shape index: {}]   ;;  %s573_s5 = inlined_call_operand.vmem [shape: bf16[64,6], index: 5, kind: input, shape index: {}]   ;;  %s574_s6 = inlined_call_operand.vmem [shape: f32[1,6], index: 6, kind: input, shape index: {}]   ;;  %s575_s7 = inlined_call_operand.vmem [shape: f32[16,6], index: 7, kind: output, shape index: {0}]   ;;  %s576_s8 = inlined_call_operand.vmem [shape: f32[16,6], index: 8, kind: output, shape index: {1}]  }
   0x1   :  { %15 = vsyncpa [#allocation5], 0  ;;  %s456_s27 = smov [#allocation2]  }
   0x2   :  { %s21_s28 = sshll.u32 %s456_s27, 4  ;;  %s22_s28 = int_to_ptr.vmem [resolvable:$true] %s21_s28 }
   0x3   :  { %s420_s29 = scalar_lea.vmem %s22_s28, 256  ;;  %p425_p1 = scmp.lt.s32.totalorder %s22_s28, %s22_s28 }
   0x4   :  { %p421_p0 = scmp.ne.s32.totalorder %s22_s28, %s420_s29  ;;  %p426_p2 = scmp.lt.s32.totalorder %s420_s29, %s420_s29 }
   0x6   :  { %p427_p3 = por %p426_p2, %p425_p1 }
   0x8   :  { %p428_p4 = pnand %p427_p3, %p421_p0 }
   0xa   :  { %431 = shalt.err (!%p428_p4)
}
   0xb   :  { %s457_s30 = smov 128   ;;  %s458_s9 = smov 8  }
   0xc   :  { %27 = dma.hbm_to_vmem [thread:$0]  %s568_s0, 256, %s22_s28, [#allocation3], %s457_s30, %s457_s30, %s458_s9  }
   0xd   :  { %s459_s12 = smov [#allocation4]  }
   0xe   :  { %s40_s13 = sshll.u32 %s459_s12, 4  ;;  %s41_s13 = int_to_ptr.vmem [resolvable:$true] %s40_s13 }
   0xf   :  { %s440_s14 = scalar_lea.vmem %s41_s13, 16  ;;  %s444_s15 = scalar_lea.vmem %s41_s13, 32 }
  0x10   :  { %p441_p5 = scmp.ne.s32.totalorder %s41_s13, %s440_s14  ;;  %p445_p6 = scmp.lt.s32.totalorder %s41_s13, %s41_s13 }
  0x11   :  { %p446_p7 = scmp.lt.s32.totalorder %s444_s15, %s440_s14 }
  0x13   :  { %p447_p8 = por %p446_p7, %p445_p6 }
  0x15   :  { %p448_p9 = pnand %p447_p8, %p441_p5 }
  0x17   :  { %451 = shalt.err (!%p448_p9)
}
  0x18   :  { %43 = dma.hbm_to_vmem [thread:$0]  %s572_s4, 16, %s41_s13, [#allocation5]  }
  0x19   :  { %452 = dma.done.wait [#allocation3], 256  }
  0x1a   :  { %453 = vsyncadd [#allocation3], 4294967040 }
  0x1b   :  { %454 = dma.done.wait [#allocation5], 16  }
  0x1c   :  { %455 = vsyncadd [#allocation5], 4294967280  ;;  %v460_v0 = vmov 0.0   ;;  %vm461_vm0 = vmmov 0   ;;  %v395_v1 = vld [vmem:[%s569_s1] sm:$0xff]   ;;  %v56_v3 = vld [vmem:[#allocation2 + $0x8] sm:$0xff] }
  0x1d   :  { %359 = vmatprep.subr.bf16.mxu0 %v460_v0  ;;  %361 = vmatprep.mubr.msk.bf16.mxu0 %vm461_vm0, %v460_v0  ;;  %v55_v2 = vld [vmem:[#allocation2] sm:$0xff]  ;;  %vm73_vm1 = vcmask 130048   ;;  %v396_v5 = vld [vmem:[%s571_s3 + $0x18] sm:$0xff]   ;;  %v397_v6 = vld [vmem:[%s571_s3 + $0x10] sm:$0xff]   ;;  %vm160_vm2 = vcmask 523264   ;;  %vm291_vm3 = vcmask 48128  }
  0x1e   :  { %365 = vmatprep.subr.bf16.mxu1 %v460_v0  ;;  %373 = vmatprep.mubr.msk.bf16.mxu1 %vm461_vm0, %v460_v0  ;;  %v57_v4 = vpack.c.bf16 %v56_v3, %v55_v2  ;;  %v398_v7 = vld [vmem:[%s571_s3 + $0x8] sm:$0xff]   ;;  %v399_v8 = vld [vmem:[%s571_s3] sm:$0xff]   ;;  %v400_v9 = vld [vmem:[%s573_s5 + $0x18] sm:$0xff]  }
  0x1f   :  { %360 = vmatpush3.bf16.msra.mxu0 %v395_v1  ;;  %366 = vmatpush3.bf16.msra.mxu1 %v396_v5  ;;  %v332_v10 = vld [vmem:[%s570_s2] ss:$0 sm:$0xff]  ;;  %v401_v20 = vld [vmem:[%s573_s5 + $0x10] sm:$0xff]   ;;  %v402_v21 = vld [vmem:[%s573_s5 + $0x8] sm:$0xff]  }
  0x20   :  { %377 = vmatprep.subr.bf16.mxu0 %v460_v0  ;;  %367 = vmatprep.subr.bf16.mxu1 %v460_v0  ;;  %v403_v22 = vld [vmem:[%s573_s5] sm:$0xff]   ;;  %v335_v23 = vld [vmem:[#allocation4] ss:$0 sm:$0xff] }
  0x21   :  { %v341_v33 = vld [vmem:[%s574_s6] ss:$0 sm:$0xff] }
  0x22   :  { %362 = vmatmul.mubr.msk.bf16.vlgmr.msra.gmra.mxu0 %vm73_vm1, %v57_v4 }
  0x23   :  { %385 = vmatprep.mubr.msk.bf16.mxu0 %vm461_vm0, %v460_v0  ;;  %368 = vmatpush3.bf16.msra.mxu1 %v397_v6 }
  0x24   :  { %369 = vmatprep.subr.bf16.mxu1 %v460_v0  ;;  %378 = vmatpush3.bf16.msra.mxu0 %v400_v9 }
  0x25   :  { %379 = vmatprep.subr.bf16.mxu0 %v460_v0 }
  0x27   :  { %370 = vmatpush3.bf16.msra.mxu1 %v398_v7 }
  0x28   :  { %371 = vmatprep.subr.bf16.mxu1 %v460_v0  ;;  %380 = vmatpush3.bf16.msra.mxu0 %v401_v20 }
  0x29   :  { %381 = vmatprep.subr.bf16.mxu0 %v460_v0 }
  0x2b   :  { %372 = vmatpush3.bf16.msra.mxu1 %v399_v8 }
  0x2c   :  { %382 = vmatpush3.bf16.msra.mxu0 %v402_v21 }
  0x2d   :  { %383 = vmatprep.subr.bf16.mxu0 %v460_v0 }
  0x30   :  { %384 = vmatpush3.bf16.msra.mxu0 %v403_v22 }
  0xe2   :  { %v111_v11 = vpop.f32.mrf.mxu0 }
  0xe3   :  { %v112_v13 = vadd.f32 %v332_v10, %v111_v11 }
  0xe4   :  { %v363_v12 = vpop.f32.mrf.mxu0 }
  0xe5   :  { %v118_v17 = vmax.f32 %v112_v13, 0.0 }
  0xe6   :  { %v114_v14 = vpop.f32.mrf.mxu0 }
  0xe7   :  { %v115_v15 = vadd.f32 %v332_v10, %v114_v14 }
  0xe8   :  { %v364_v16 = vpop.f32.mrf.mxu0 }
  0xe9   :  { %v119_v18 = vmax.f32 %v115_v15, 0.0 }
  0xeb   :  { %v120_v19 = vpack.c.bf16 %v119_v18, %v118_v17 }
  0xed   :  { %374 = vmatmul.mubr.msk.bf16.vlgmr.msra.gmra.mxu1 %vm160_vm2, %v120_v19 }
 0x1ad   :  { %v198_v24 = vpop.f32.mrf.mxu1 }
 0x1ae   :  { %v199_v26 = vadd.f32 %v335_v23, %v198_v24 }
 0x1af   :  { %v375_v25 = vpop.f32.mrf.mxu1 }
 0x1b0   :  { %v205_v30 = vmax.f32 %v199_v26, 0.0 }
 0x1b1   :  { %v201_v27 = vpop.f32.mrf.mxu1 }
 0x1b2   :  { %v202_v28 = vadd.f32 %v335_v23, %v201_v27 }
 0x1b3   :  { %v376_v29 = vpop.f32.mrf.mxu1 }
 0x1b4   :  { %v206_v31 = vmax.f32 %v202_v28, 0.0 }
 0x1b6   :  { %v207_v32 = vpack.c.bf16 %v206_v31, %v205_v30 }
 0x1b8   :  { %386 = vmatmul.mubr.msk.bf16.vlgmr.msra.gmra.mxu0 %vm160_vm2, %v207_v32 }
 0x278   :  { %v284_v34 = vpop.f32.mrf.mxu0 }
 0x279   :  { %v285_v35 = vadd.f32 %v341_v33, %v284_v34 }
 0x27a   :  { %v387_v36 = vpop.f32.mrf.mxu0 }
 0x27b   :  { %316 = vst.msk [vmem:[%s575_s7] sm:$0xff] %vm291_vm3, %v285_v35  ;;  %v292_v37 = vsel %vm291_vm3, %v285_v35, -inf }
 0x27c   :  { %293 = vmax.xlane.f32.xlu0 %v292_v37  ;;  %v287_v38 = vpop.f32.mrf.mxu0 }
 0x27d   :  { %v288_v39 = vadd.f32 %v341_v33, %v287_v38 }
 0x27e   :  { %v388_v40 = vpop.f32.mrf.mxu0 }
 0x27f   :  { %317 = vst.msk [vmem:[%s575_s7 + $0x8] sm:$0xff] %vm291_vm3, %v288_v39  ;;  %v295_v41 = vsel %vm291_vm3, %v288_v39, -inf }
 0x280   :  { %296 = vmax.xlane.f32.xlu0 %v295_v41 }
 0x305   :  { %v294_v42 = vpop.xlane.xlu0 %293 }
 0x306   :  { %v298_v43 = vsub.f32 %v285_v35, %v294_v42 }
 0x308   :  { %v300_v44 = vmul.f32 1.442695, %v298_v43 }
 0x309   :  { %v297_v45 = vpop.xlane.xlu0 %296 }
 0x30a   :  { %404 = vpow2.f32 %v300_v44  ;;  %v299_v46 = vsub.f32 %v288_v39, %v297_v45 }
 0x30c   :  { %v302_v47 = vmul.f32 1.442695, %v299_v46 }
 0x30e   :  { %406 = vpow2.f32 %v302_v47 }
 0x317   :  { %v405_v48 = vpop.eup %404 }
 0x318   :  { %v304_v49 = vsel %vm291_vm3, %v405_v48, 0.0 }
 0x319   :  { %305 = vadd.xlane.f32.xlu1 %v304_v49 }
 0x31b   :  { %v407_v50 = vpop.eup %406 }
 0x31c   :  { %v307_v51 = vsel %vm291_vm3, %v407_v50, 0.0 }
 0x31d   :  { %308 = vadd.xlane.f32.xlu1 %v307_v51 }
 0x3a2   :  { %v306_v52 = vpop.xlane.xlu1 %305 }
 0x3a3   :  { %408 = vlog2.f32 %v306_v52 }
 0x3a6   :  { %v309_v53 = vpop.xlane.xlu1 %308 }
 0x3a7   :  { %410 = vlog2.f32 %v309_v53 }
 0x3b0   :  { %v409_v54 = vpop.eup %408 }
 0x3b1   :  { %v311_v55 = vmul.f32 0.6931472, %v409_v54 }
 0x3b3   :  { %v314_v56 = vadd.f32 %v311_v55, %v294_v42 }
 0x3b4   :  { %v411_v57 = vpop.eup %410 }
 0x3b5   :  { %v318_v58 = vsub.f32 %v285_v35, %v314_v56  ;;  %v313_v59 = vmul.f32 0.6931472, %v411_v57 }
 0x3b7   :  { %320 = vst.msk [vmem:[%s576_s8] sm:$0xff] %vm291_vm3, %v318_v58  ;;  %v315_v60 = vadd.f32 %v313_v59, %v297_v45 }
 0x3b9   :  { %v319_v61 = vsub.f32 %v288_v39, %v315_v60 }
 0x3bb   :  { %321 = vst.msk [vmem:[%s576_s8 + $0x8] sm:$0xff] %vm291_vm3, %v319_v61 }
 0x3bc   :  { %330 = vsyncpa [#allocation3], 1 }
 0x3bd   :  { %331 = vsyncpa [#allocation5], 1 }

</bundles_post_ra>
